<compile_context>
chip_gen: v7x
topology: tpu7x:2x2x1
jax: 0.10.0
libtpu: 0.0.40
codegen_flags: <defaults>
</compile_context>

<pallas_src>
import jax
import jax.numpy as jnp
import numpy as np
from jax.experimental import pallas as pl
from jax.experimental.pallas import tpu as pltpu


def _round_up(x, m):
    return (x + m - 1) // m * m


def convnet1d_kernel(xe_ref, xo_ref, wbd_ref, bc_ref, w1_ref, b1_ref,
                     w2_ref, b2_ref, out_ref):
    # Conv1d as one im2col matmul per pool parity (bf16 operands, f32 acc).
    ce = jnp.dot(xe_ref[...], wbd_ref[...], preferred_element_type=jnp.float32)
    co = jnp.dot(xo_ref[...], wbd_ref[...], preferred_element_type=jnp.float32)

    # MaxPool1d(2) == elementwise max of even/odd conv outputs; bias + ReLU
    # commute with the max, matching PyTorch's relu -> pool ordering.
    pooled = jnp.maximum(jnp.maximum(ce, co) + bc_ref[...], 0.0)   # (TB, 512) f32

    # fc1 + ReLU (512-lane-dense LHS; the padded rows of w1 are zero).
    h = jnp.dot(pooled.astype(jnp.bfloat16), w1_ref[...],
                preferred_element_type=jnp.float32) + b1_ref[...]
    h = jnp.maximum(h, 0.0)

    # fc2 (output padded to 128 lanes -> unmasked full-width stores).
    out = jnp.dot(h.astype(jnp.bfloat16), w2_ref[...],
                  preferred_element_type=jnp.float32) + b2_ref[...]
    out_ref[...] = out.astype(out_ref.dtype)


def convnet1d_forward(x, Wc, bc, W1, b1, W2, b2, *, block_b=256):
    """x: (B, L, C_in) exactly as fed to the PyTorch module (it transposes
    to NCL internally).

    Wc: (C_out, C_in, K)        conv1 weight (PyTorch layout)
    bc: (C_out,)                conv1 bias
    W1: (hidden, C_out*L_pool)  fc1 weight (PyTorch layout)
    b1: (hidden,)
    W2: (num_classes, hidden)   fc2 weight (PyTorch layout)
    b2: (num_classes,)

    block_b: batch rows per grid step (256 for v6e/v7x MXU, 128 on v5e).
    """
    x = x.astype(jnp.float32)
    B, L, C_in = x.shape
    C_out, _, K = Wc.shape
    L_out = L - K + 1
    L_pool = L_out // 2
    hidden = W1.shape[0]
    num_classes = W2.shape[0]

    # Lane-dense padded sizes.
    flat_pad = _round_up(L_pool * C_out, 128)        # 448 -> 512
    assert flat_pad % C_out == 0
    LPp = flat_pad // C_out                          # padded pool positions (8)
    KC = K * C_in                                    # im2col window width (9)
    nc_pad = _round_up(num_classes, 128)             # 10 -> 128

    # ---- im2col (even/odd pool parity) — plain-JAX glue outside the kernel ----
    idx = 2 * jnp.arange(L_pool)[:, None] + jnp.arange(K)[None, :]   # (L_pool, K)

    def im2col(offset):
        win = x[:, idx + offset, :]                   # (B, L_pool, K, C_in)
        flat = win.reshape(B, L_pool * KC)
        return jnp.pad(flat, ((0, 0), (0, (LPp - L_pool) * KC)))

    xe = im2col(0)                                    # even conv positions
    xo = im2col(1)                                    # odd  conv positions

    # ---- parameter re-layout (once, in the wrapper) ----
    # Conv weight flattened (k, c_in)-major, then block-diagonal so the conv
    # matmul output lands directly in flattened (pool_pos, channel) order.
    wflat = jnp.transpose(Wc, (2, 1, 0)).reshape(KC, C_out)          # (9, 64)
    wbd = jnp.kron(jnp.eye(LPp, dtype=wflat.dtype), wflat)           # (72, 512)
    bct = jnp.tile(bc, LPp).reshape(1, flat_pad).astype(jnp.float32)

    # fc1: permute columns from PyTorch (channel, pos) flatten order to our
    # (pos, channel) order; zero-pad the L_pool -> LPp rows (bit-identical).
    w1p = jnp.transpose(W1.reshape(hidden, C_out, L_pool), (2, 1, 0))  # (j, c, h)
    w1p = jnp.pad(w1p, ((0, LPp - L_pool), (0, 0), (0, 0)))
    w1p = w1p.reshape(flat_pad, hidden)
    b1p = b1.reshape(1, hidden).astype(jnp.float32)

    # fc2: transpose + zero-pad output columns to a full 128-lane store.
    w2p = jnp.pad(W2.T, ((0, 0), (0, nc_pad - num_classes)))
    b2p = jnp.pad(b2, (0, nc_pad - num_classes)).reshape(1, nc_pad).astype(jnp.float32)

    # ---- batch tiling ----
    TB = min(block_b, _round_up(B, 8))
    Bp = _round_up(B, TB)
    xe = jnp.pad(xe, ((0, Bp - B), (0, 0))).astype(jnp.bfloat16)
    xo = jnp.pad(xo, ((0, Bp - B), (0, 0))).astype(jnp.bfloat16)
    wbd = wbd.astype(jnp.bfloat16)
    w1p = w1p.astype(jnp.bfloat16)
    w2p = w2p.astype(jnp.bfloat16)

    const = lambda i: (0, 0)
    out = pl.pallas_call(
        convnet1d_kernel,
        out_shape=jax.ShapeDtypeStruct((Bp, nc_pad), jnp.float32),
        grid_spec=pltpu.PrefetchScalarGridSpec(
            num_scalar_prefetch=0,
            grid=(Bp // TB,),
            in_specs=[
                pl.BlockSpec((TB, LPp * KC), lambda i: (i, 0)),    # xe (even im2col)
                pl.BlockSpec((TB, LPp * KC), lambda i: (i, 0)),    # xo (odd im2col)
                pl.BlockSpec((LPp * KC, flat_pad), const),         # conv block-diag W
                pl.BlockSpec((1, flat_pad), const),                # conv bias (tiled)
                pl.BlockSpec((flat_pad, hidden), const),           # fc1 W (permuted+padded)
                pl.BlockSpec((1, hidden), const),                  # fc1 bias
                pl.BlockSpec((hidden, nc_pad), const),             # fc2 W (padded cols)
                pl.BlockSpec((1, nc_pad), const),                  # fc2 bias (padded)
            ],
            out_specs=pl.BlockSpec((TB, nc_pad), lambda i: (i, 0)),
        ),
        compiler_params=pltpu.CompilerParams(
            dimension_semantics=("parallel",)),
    )(xe, xo, wbd, bct, w1p, b1p, w2p, b2p)

    return out[:B, :num_classes]


def ref_forward(x, Wc, bc, W1, b1, W2, b2):
    """Pure-JAX f32 reference reproducing the PyTorch forward exactly (NCL)."""
    xt = jnp.transpose(x.astype(jnp.float32), (0, 2, 1))             # (B, C_in, L)
    B, C_in, L = xt.shape
    C_out, _, K = Wc.shape
    L_out = L - K + 1
    y = jnp.zeros((B, C_out, L_out), jnp.float32)
    for k in range(K):
        y = y + jnp.einsum('bil,oi->bol', xt[:, :, k:k + L_out], Wc[:, :, k])
    y = y + bc[None, :, None]
    y = jnp.maximum(y, 0.0)
    L_pool = L_out // 2
    y = y[:, :, :2 * L_pool].reshape(B, C_out, L_pool, 2).max(axis=-1)
    flat = y.reshape(B, -1)                                          # (B, C_out*L_pool)
    h = jnp.maximum(flat @ W1.T + b1, 0.0)
    return h @ W2.T + b2


if __name__ == "__main__":
    key = jax.random.PRNGKey(0)
    B, input_size, C_in = 2, 16, 3
    num_classes = 10
    C_out, K, hidden = 64, 3, 128
    L_out = input_size - K + 1          # 14
    L_pool = L_out // 2                 # 7
    flat_dim = C_out * L_pool           # 448 == 64 * ((input_size - 3 + 1) // 2)

    ks = jax.random.split(key, 7)
    x = jax.random.normal(ks[0], (B, input_size, C_in), jnp.float32)
    Wc = jax.random.normal(ks[1], (C_out, C_in, K), jnp.float32) * 0.1
    bc = jax.random.normal(ks[2], (C_out,), jnp.float32) * 0.1
    W1 = jax.random.normal(ks[3], (hidden, flat_dim), jnp.float32) * 0.05
    b1 = jax.random.normal(ks[4], (hidden,), jnp.float32) * 0.05
    W2 = jax.random.normal(ks[5], (num_classes, hidden), jnp.float32) * 0.05
    b2 = jax.random.normal(ks[6], (num_classes,), jnp.float32) * 0.05

    out = jax.block_until_ready(convnet1d_forward(x, Wc, bc, W1, b1, W2, b2))

    ref = ref_forward(x, Wc, bc, W1, b1, W2, b2)
    # bf16 MXU operands with f32 accumulation -> loosened tolerance vs f32 ref.
    np.testing.assert_allclose(np.asarray(out), np.asarray(ref),
                               rtol=2e-2, atol=2e-2)
    print("KERNEL_OK")
</pallas_src>

<mosaic_0001>
module attributes {stable_mosaic.version = 11 : i64} {
  func.func @convnet1d_kernel(%arg0: i32, %arg1: memref<8x72xbf16, #tpu.memory_space<vmem>>, %arg2: memref<8x72xbf16, #tpu.memory_space<vmem>>, %arg3: memref<72x512xbf16, #tpu.memory_space<vmem>>, %arg4: memref<1x512xf32, #tpu.memory_space<vmem>>, %arg5: memref<512x128xbf16, #tpu.memory_space<vmem>>, %arg6: memref<1x128xf32, #tpu.memory_space<vmem>>, %arg7: memref<128x128xbf16, #tpu.memory_space<vmem>>, %arg8: memref<1x128xf32, #tpu.memory_space<vmem>>, %arg9: memref<8x128xf32, #tpu.memory_space<vmem>>) attributes {dimension_semantics = [#tpu.dimension_semantics<parallel>], iteration_bounds = array<i64: 1>, scalar_prefetch = 0 : i64, scratch_operands = 0 : i64, tpu.core_type = #tpu.core_type<tc>, window_params = [{transform_indices = @transform_0, window_bounds = array<i64: 8, 72>}, {transform_indices = @transform_1, window_bounds = array<i64: 8, 72>}, {pipeline_mode = #tpu.pipeline_mode<synchronous>, transform_indices = @transform_2, window_bounds = array<i64: 72, 512>}, {pipeline_mode = #tpu.pipeline_mode<synchronous>, transform_indices = @transform_3, window_bounds = array<i64: 1, 512>}, {pipeline_mode = #tpu.pipeline_mode<synchronous>, transform_indices = @transform_4, window_bounds = array<i64: 512, 128>}, {pipeline_mode = #tpu.pipeline_mode<synchronous>, transform_indices = @transform_5, window_bounds = array<i64: 1, 128>}, {pipeline_mode = #tpu.pipeline_mode<synchronous>, transform_indices = @transform_6, window_bounds = array<i64: 128, 128>}, {pipeline_mode = #tpu.pipeline_mode<synchronous>, transform_indices = @transform_7, window_bounds = array<i64: 1, 128>}, {transform_indices = @transform_8, window_bounds = array<i64: 8, 128>}]} {
    %c0 = arith.constant 0 : index
    %c0_0 = arith.constant 0 : index
    %0 = vector.load %arg1[%c0, %c0_0] : memref<8x72xbf16, #tpu.memory_space<vmem>>, vector<8x72xbf16>
    %c0_1 = arith.constant 0 : index
    %c0_2 = arith.constant 0 : index
    %1 = vector.load %arg3[%c0_1, %c0_2] : memref<72x512xbf16, #tpu.memory_space<vmem>>, vector<72x512xbf16>
    %cst = arith.constant dense<0.000000e+00> : vector<8x512xf32>
    %2 = tpu.matmul %0, %1, %cst {dimension_numbers = #tpu.dot_dimension_numbers<[1], [0], [0], [1], [0, 0, 1, 1], [], []>} : vector<8x72xbf16>, vector<72x512xbf16>, vector<8x512xf32> -> vector<8x512xf32>
    %c0_3 = arith.constant 0 : index
    %c0_4 = arith.constant 0 : index
    %3 = vector.load %arg2[%c0_3, %c0_4] : memref<8x72xbf16, #tpu.memory_space<vmem>>, vector<8x72xbf16>
    %c0_5 = arith.constant 0 : index
    %c0_6 = arith.constant 0 : index
    %4 = vector.load %arg3[%c0_5, %c0_6] : memref<72x512xbf16, #tpu.memory_space<vmem>>, vector<72x512xbf16>
    %cst_7 = arith.constant dense<0.000000e+00> : vector<8x512xf32>
    %5 = tpu.matmul %3, %4, %cst_7 {dimension_numbers = #tpu.dot_dimension_numbers<[1], [0], [0], [1], [0, 0, 1, 1], [], []>} : vector<8x72xbf16>, vector<72x512xbf16>, vector<8x512xf32> -> vector<8x512xf32>
    %6 = arith.maximumf %2, %5 : vector<8x512xf32>
    %c0_8 = arith.constant 0 : index
    %c0_9 = arith.constant 0 : index
    %7 = vector.load %arg4[%c0_8, %c0_9] : memref<1x512xf32, #tpu.memory_space<vmem>>, vector<1x512xf32>
    %8 = vector.broadcast %7 : vector<1x512xf32> to vector<8x512xf32>
    %9 = arith.addf %6, %8 : vector<8x512xf32>
    %cst_10 = arith.constant 0.000000e+00 : f32
    %10 = vector.broadcast %cst_10 : f32 to vector<8x512xf32>
    %11 = arith.maximumf %9, %10 : vector<8x512xf32>
    %12 = arith.truncf %11 : vector<8x512xf32> to vector<8x512xbf16>
    %c0_11 = arith.constant 0 : index
    %c0_12 = arith.constant 0 : index
    %13 = vector.load %arg5[%c0_11, %c0_12] : memref<512x128xbf16, #tpu.memory_space<vmem>>, vector<512x128xbf16>
    %cst_13 = arith.constant dense<0.000000e+00> : vector<8x128xf32>
    %14 = tpu.matmul %12, %13, %cst_13 {dimension_numbers = #tpu.dot_dimension_numbers<[1], [0], [0], [1], [0, 0, 1, 1], [], []>} : vector<8x512xbf16>, vector<512x128xbf16>, vector<8x128xf32> -> vector<8x128xf32>
    %c0_14 = arith.constant 0 : index
    %c0_15 = arith.constant 0 : index
    %15 = vector.load %arg6[%c0_14, %c0_15] : memref<1x128xf32, #tpu.memory_space<vmem>>, vector<1x128xf32>
    %16 = vector.broadcast %15 : vector<1x128xf32> to vector<8x128xf32>
    %17 = arith.addf %14, %16 : vector<8x128xf32>
    %cst_16 = arith.constant 0.000000e+00 : f32
    %18 = vector.broadcast %cst_16 : f32 to vector<8x128xf32>
    %19 = arith.maximumf %17, %18 : vector<8x128xf32>
    %20 = arith.truncf %19 : vector<8x128xf32> to vector<8x128xbf16>
    %c0_17 = arith.constant 0 : index
    %c0_18 = arith.constant 0 : index
    %21 = vector.load %arg7[%c0_17, %c0_18] : memref<128x128xbf16, #tpu.memory_space<vmem>>, vector<128x128xbf16>
    %cst_19 = arith.constant dense<0.000000e+00> : vector<8x128xf32>
    %22 = tpu.matmul %20, %21, %cst_19 {dimension_numbers = #tpu.dot_dimension_numbers<[1], [0], [0], [1], [0, 0, 1, 1], [], []>} : vector<8x128xbf16>, vector<128x128xbf16>, vector<8x128xf32> -> vector<8x128xf32>
    %c0_20 = arith.constant 0 : index
    %c0_21 = arith.constant 0 : index
    %23 = vector.load %arg8[%c0_20, %c0_21] : memref<1x128xf32, #tpu.memory_space<vmem>>, vector<1x128xf32>
    %24 = vector.broadcast %23 : vector<1x128xf32> to vector<8x128xf32>
    %25 = arith.addf %22, %24 : vector<8x128xf32>
    %c0_22 = arith.constant 0 : index
    %c0_23 = arith.constant 0 : index
    %26 = vector.load %arg9[%c0_22, %c0_23] : memref<8x128xf32, #tpu.memory_space<vmem>>, vector<8x128xf32>
    tpu.vector_store %arg9[%c0_22, %c0_23], %25 {strides = array<i32>} : memref<8x128xf32, #tpu.memory_space<vmem>>, vector<8x128xf32>,
    return
  }
  func.func @transform_0(%arg0: i32) -> (i32, i32) {
    %c0_i32 = arith.constant 0 : i32
    %c0_i32_0 = arith.constant 0 : i32
    return %arg0, %c0_i32 : i32, i32
  }
  func.func @transform_1(%arg0: i32) -> (i32, i32) {
    %c0_i32 = arith.constant 0 : i32
    %c0_i32_0 = arith.constant 0 : i32
    return %arg0, %c0_i32 : i32, i32
  }
  func.func @transform_2(%arg0: i32) -> (i32, i32) {
    %c0_i32 = arith.constant 0 : i32
    %c0_i32_0 = arith.constant 0 : i32
    %c0_i32_1 = arith.constant 0 : i32
    return %c0_i32, %c0_i32_0 : i32, i32
  }
  func.func @transform_3(%arg0: i32) -> (i32, i32) {
    %c0_i32 = arith.constant 0 : i32
    %c0_i32_0 = arith.constant 0 : i32
    %c0_i32_1 = arith.constant 0 : i32
    return %c0_i32, %c0_i32_0 : i32, i32
  }
  func.func @transform_4(%arg0: i32) -> (i32, i32) {
    %c0_i32 = arith.constant 0 : i32
    %c0_i32_0 = arith.constant 0 : i32
    %c0_i32_1 = arith.constant 0 : i32
    return %c0_i32, %c0_i32_0 : i32, i32
  }
  func.func @transform_5(%arg0: i32) -> (i32, i32) {
    %c0_i32 = arith.constant 0 : i32
    %c0_i32_0 = arith.constant 0 : i32
    %c0_i32_1 = arith.constant 0 : i32
    return %c0_i32, %c0_i32_0 : i32, i32
  }
  func.func @transform_6(%arg0: i32) -> (i32, i32) {
    %c0_i32 = arith.constant 0 : i32
    %c0_i32_0 = arith.constant 0 : i32
    %c0_i32_1 = arith.constant 0 : i32
    return %c0_i32, %c0_i32_0 : i32, i32
  }
  func.func @transform_7(%arg0: i32) -> (i32, i32) {
    %c0_i32 = arith.constant 0 : i32
    %c0_i32_0 = arith.constant 0 : i32
    %c0_i32_1 = arith.constant 0 : i32
    return %c0_i32, %c0_i32_0 : i32, i32
  }
  func.func @transform_8(%arg0: i32) -> (i32, i32) {
    %c0_i32 = arith.constant 0 : i32
    %c0_i32_0 = arith.constant 0 : i32
    return %arg0, %c0_i32 : i32, i32
  }
}

</mosaic_0001>

<bundles_post_ra>
// kernel: tpu_custom_call.1
= control target key start
LH: loop header
LB: loop body
LE: loop exit
PB: predicated region body
PF: predicated region fallthrough
CT: control target
= control target key end

     0   :  { %13 = vsyncpa [#allocation3], 0  ;;  %s1438_s0 = inlined_call_operand.hbm [shape: bf16[8,72], index: 0, kind: input, shape index: {}]   ;;  %s1439_s1 = inlined_call_operand.hbm [shape: bf16[8,72], index: 1, kind: input, shape index: {}]   ;;  %s1440_s2 = inlined_call_operand.hbm [shape: bf16[72,512], index: 2, kind: input, shape index: {}]   ;;  %s1441_s3 = inlined_call_operand.vmem [shape: f32[1,512], index: 3, kind: input, shape index: {}]   ;;  %s1442_s4 = inlined_call_operand.hbm [shape: bf16[512,128], index: 4, kind: input, shape index: {}]   ;;  %s1443_s5 = inlined_call_operand.vmem [shape: f32[1,128], index: 5, kind: input, shape index: {}]   ;;  %s1444_s6 = inlined_call_operand.hbm [shape: bf16[128,128], index: 6, kind: input, shape index: {}]   ;;  %s1445_s7 = inlined_call_operand.vmem [shape: f32[1,128], index: 7, kind: input, shape index: {}]   ;;  %s1446_s8 = inlined_call_operand.hbm [shape: f32[8,128], index: 8, kind: output, shape index: {}]  }
   0x1   :  { %14 = vsyncpa [#allocation6], 0 }
   0x2   :  { %15 = vsyncpa [#allocation9], 0 }
   0x3   :  { %16 = vsyncpa [#allocation4], 0  ;;  %s1265_s27 = smov [#allocation5]   ;;  %s1266_s29 = smov [#allocation8]  }
   0x4   :  { %s33_s28 = sshll.u32 %s1265_s27, 4  ;;  %s56_s30 = sshll.u32 %s1266_s29, 4  ;;  %s34_s28 = int_to_ptr.vmem [resolvable:$true] %s33_s28  ;;  %s1323_s30 = int_to_ptr.vmem [resolvable:$true] %s56_s30 }
   0x5   :  { %s1125_s11 = scalar_lea.hbm %s1439_s1, 64 }
   0x6   :  { %p1126_p0 = scmp.ne.s32.totalorder %s1439_s1, %s1125_s11  ;;  %p1129_p1 = scmp.lt.u32.totalorder %s1125_s11, %s1439_s1 }
   0x8   :  { %p1131_p2 = pnand %p1129_p1, %p1126_p0 }
   0xa   :  { %1134 = shalt.err (!%p1131_p2)
}
   0xb   :  { %s1135_s16 = scalar_lea.vmem %s34_s28, 64  ;;  %p1140_p4 = scmp.lt.s32.totalorder %s34_s28, %s34_s28 }
   0xc   :  { %p1136_p3 = scmp.ne.s32.totalorder %s34_s28, %s1135_s16  ;;  %p1141_p5 = scmp.lt.s32.totalorder %s1135_s16, %s1135_s16 }
   0xe   :  { %p1142_p6 = por %p1141_p5, %p1140_p4 }
  0x10   :  { %p1143_p7 = pnand %p1142_p6, %p1136_p3 }
  0x12   :  { %1146 = shalt.err (!%p1143_p7)
}
  0x13   :  { %36 = dma.hbm_to_vmem [thread:$0]  %s1439_s1, 64, %s34_s28, [#allocation6]  }
  0x14   :  { %s1147_s21 = scalar_lea.hbm %s1442_s4, 4096 }
  0x15   :  { %p1148_p8 = scmp.ne.s32.totalorder %s1442_s4, %s1147_s21  ;;  %p1151_p9 = scmp.lt.u32.totalorder %s1147_s21, %s1442_s4 }
  0x17   :  { %p1153_p10 = pnand %p1151_p9, %p1148_p8 }
  0x19   :  { %1156 = shalt.err (!%p1153_p10)
}
  0x1a   :  { %s1157_s26 = scalar_lea.vmem %s1323_s30, 4096  ;;  %p1162_p12 = scmp.lt.s32.totalorder %s1323_s30, %s1323_s30 }
  0x1b   :  { %p1158_p11 = scmp.ne.s32.totalorder %s1323_s30, %s1157_s26  ;;  %p1163_p13 = scmp.lt.s32.totalorder %s1157_s26, %s1157_s26 }
  0x1d   :  { %p1164_p0 = por %p1163_p13, %p1162_p12 }
  0x1f   :  { %p1165_p1 = pnand %p1164_p0, %p1158_p11 }
  0x21   :  { %1168 = shalt.err (!%p1165_p1)
}
  0x22   :  { %s1267_s1 = smov 64   ;;  %s1268_s27 = smov 4  }
  0x23   :  { %62 = dma.hbm_to_vmem [thread:$0]  %s1442_s4, 4096, %s1323_s30, [#allocation9], %s1267_s1, %s1267_s1, %s1268_s27  }
  0x24   :  { %s1269_s9 = smov [#allocation2]   ;;  %s1270_s11 = smov [#allocation7]  }
  0x25   :  { %s23_s10 = sshll.u32 %s1269_s9, 4  ;;  %s42_s12 = sshll.u32 %s1270_s11, 4  ;;  %s24_s10 = int_to_ptr.vmem [resolvable:$true] %s23_s10  ;;  %s1357_s12 = int_to_ptr.vmem [resolvable:$true] %s42_s12 }
  0x26   :  { %s1169_s15 = scalar_lea.hbm %s1438_s0, 64 }
  0x27   :  { %p1170_p2 = scmp.ne.s32.totalorder %s1438_s0, %s1169_s15  ;;  %p1173_p3 = scmp.lt.u32.totalorder %s1169_s15, %s1438_s0 }
  0x29   :  { %p1175_p4 = pnand %p1173_p3, %p1170_p2 }
  0x2b   :  { %1178 = shalt.err (!%p1175_p4)
}
  0x2c   :  { %s1179_s4 = scalar_lea.vmem %s24_s10, 64  ;;  %p1184_p6 = scmp.lt.s32.totalorder %s24_s10, %s24_s10 }
  0x2d   :  { %p1180_p5 = scmp.ne.s32.totalorder %s24_s10, %s1179_s4  ;;  %p1185_p7 = scmp.lt.s32.totalorder %s1179_s4, %s1179_s4 }
  0x2f   :  { %p1186_p8 = por %p1185_p7, %p1184_p6 }
  0x31   :  { %p1187_p9 = pnand %p1186_p8, %p1180_p5 }
  0x33   :  { %1190 = shalt.err (!%p1187_p9)
}
  0x34   :  { %26 = dma.hbm_to_vmem [thread:$0]  %s1438_s0, 64, %s24_s10, [#allocation3]  }
  0x35   :  { %s1191_s23 = scalar_lea.hbm %s1440_s2, 2304 }
  0x36   :  { %p1192_p10 = scmp.ne.s32.totalorder %s1440_s2, %s1191_s23  ;;  %p1195_p11 = scmp.lt.u32.totalorder %s1191_s23, %s1440_s2 }
  0x38   :  { %p1197_p12 = pnand %p1195_p11, %p1192_p10 }
  0x3a   :  { %1200 = shalt.err (!%p1197_p12)
}
  0x3b   :  { %s1201_s29 = scalar_lea.vmem %s1357_s12, 2304  ;;  %p1206_p0 = scmp.lt.s32.totalorder %s1357_s12, %s1357_s12 }
  0x3c   :  { %p1202_p13 = scmp.ne.s32.totalorder %s1357_s12, %s1201_s29  ;;  %p1207_p1 = scmp.lt.s32.totalorder %s1201_s29, %s1201_s29 }
  0x3e   :  { %p1208_p2 = por %p1207_p1, %p1206_p0 }
  0x40   :  { %p1209_p3 = pnand %p1208_p2, %p1202_p13 }
  0x42   :  { %1212 = shalt.err (!%p1209_p3)
}
  0x43   :  { %s1271_s0 = smov 256   ;;  %s1272_s9 = smov 16  }
  0x44   :  { %48 = dma.hbm_to_vmem [thread:$0]  %s1440_s2, 2304, %s1357_s12, [#allocation6], %s1271_s0, %s1271_s0, %s1272_s9  }
  0x45   :  { %s1273_s13 = smov [#allocation10]   ;;  %s1213_s17 = scalar_lea.hbm %s1444_s6, 1024 }
  0x46   :  { %s70_s14 = sshll.u32 %s1273_s13, 4  ;;  %p1214_p4 = scmp.ne.s32.totalorder %s1444_s6, %s1213_s17  ;;  %s71_s14 = int_to_ptr.vmem [resolvable:$true] %s70_s14 }
  0x47   :  { %p1217_p5 = scmp.lt.u32.totalorder %s1213_s17, %s1444_s6 }
  0x49   :  { %p1219_p6 = pnand %p1217_p5, %p1214_p4 }
  0x4b   :  { %1222 = shalt.err (!%p1219_p6)
}
  0x4c   :  { %s1223_s20 = scalar_lea.vmem %s71_s14, 1024  ;;  %p1228_p8 = scmp.lt.s32.totalorder %s71_s14, %s71_s14 }
  0x4d   :  { %p1224_p7 = scmp.ne.s32.totalorder %s71_s14, %s1223_s20  ;;  %p1229_p9 = scmp.lt.s32.totalorder %s1223_s20, %s1223_s20 }
  0x4f   :  { %p1230_p10 = por %p1229_p9, %p1228_p8 }
  0x51   :  { %p1231_p11 = pnand %p1230_p10, %p1224_p7 }
  0x53   :  { %1234 = shalt.err (!%p1231_p11)
}
  0x54   :  { %76 = dma.hbm_to_vmem [thread:$0]  %s1444_s6, 1024, %s71_s14, [#allocation9], %s1267_s1, %s1267_s1, %s1268_s27  }
  0x55   :  { %1257 = dma.done.wait [#allocation3], 64  }
  0x56   :  { %1258 = vsyncadd [#allocation3], 4294967232 }
  0x57   :  { %1259 = dma.done.wait [#allocation6], 2368  }
  0x58   :  { %1260 = vsyncadd [#allocation6], 4294964928 }
  0x59   :  { %1261 = dma.done.wait [#allocation9], 5120  }
  0x5a   :  { %1262 = vsyncadd [#allocation9], 4294962176  ;;  %v1274_v0 = vmov 0   ;;  %v1057_v1 = vld [vmem:[#allocation7 + $0x4] ss:$16 sps:$4 sm:$0xff]   ;;  %vm208_vm0 = vcmask 1043456   ;;  %v395_v59 = vlaneseq }
  0x5b   :  { %253 = vmatprep.mubr.bf16.mxu1 %v1274_v0  ;;  %339 = vmatprep.mubr.bf16.mxu0 %v1274_v0  ;;  %v1059_v2 = vld [vmem:[#allocation7] ss:$16 sps:$4 sm:$0xff]   ;;  %v1060_v3 = vld [vmem:[#allocation7 + $0x24] ss:$16 sps:$4 sm:$0xff]   ;;  %v1073_v12 = vld [vmem:[#allocation7 + $0xc] ss:$16 sps:$4 sm:$0xff]  }
  0x5c   :  { %221 = vmatprep.subr.bf16.mxu1 %v1057_v1  ;;  %307 = vmatprep.subr.bf16.mxu0 %v1057_v1  ;;  %v1062_v4 = vld [vmem:[#allocation7 + $0x20] ss:$16 sps:$4 sm:$0xff]   ;;  %v1063_v5 = vld [vmem:[#allocation7 + $0x44] ss:$16 sps:$4 sm:$0xff]   ;;  %vm204_vm1 = vcmask 588800   ;;  %v113_v13 = vld [vmem:[#allocation7 + $0x88] sm:$0xff] }
  0x5d   :  { %222 = vmatpush1.bf16.msra.mxu1 %v1059_v2  ;;  %308 = vmatpush1.bf16.msra.mxu0 %v1059_v2  ;;  %v1065_v6 = vld [vmem:[#allocation7 + $0x40] ss:$16 sps:$4 sm:$0xff]   ;;  %v1066_v7 = vld [vmem:[#allocation7 + $0x64] ss:$16 sps:$4 sm:$0xff]   ;;  %v95_v16 = vld [vmem:[#allocation2] sm:$0xf]  ;;  %v919_v19 = vcombine.low %v113_v13, %v113_v13  ;;  %v920_v35 = vcombine.high %v113_v13, %v113_v13 }
  0x5e   :  { %223 = vmatprep.subr.bf16.mxu1 %v1060_v3  ;;  %309 = vmatprep.subr.bf16.mxu0 %v1060_v3  ;;  %v112_v8 = vld [vmem:[#allocation7 + $0x80] sm:$0xff]  ;;  %v1085_v15 = vld [vmem:[#allocation8 + $0x40] sm:$0xff]   ;;  %v1071_v17 = vld [vmem:[#allocation7 + $0x8] ss:$16 sps:$4 sm:$0xff]   ;;  %v396_v60 = vshrl.u32 %v395_v59, 7  ;;  %vm1276_vm2 = vmmov 0  }
  0x5f   :  { %v1068_v9 = vld [vmem:[#allocation7 + $0x60] ss:$16 sps:$4 sm:$0xff]   ;;  %v918_v10 = vcombine.high %v112_v8, %v112_v8  ;;  %v917_v11 = vcombine.low %v112_v8, %v112_v8  ;;  %v303_v18 = vld [vmem:[#allocation5] sm:$0xf]  ;;  %v1074_v22 = vld [vmem:[#allocation7 + $0x28] ss:$16 sps:$4 sm:$0xff]  }
  0x60   :  { %v1076_v20 = vld [vmem:[#allocation7 + $0x2c] ss:$16 sps:$4 sm:$0xff]   ;;  %v1086_v21 = vld [vmem:[#allocation8] sm:$0xff]   ;;  %v216_v25 = vsel %vm208_vm0, %v919_v19, 0  ;;  %v1089_v27 = vld [vmem:[#allocation8 + $0x50] sm:$0xff]   ;;  %v397_v61 = vsub.s32 0, %v396_v60 }
  0x61   :  { %224 = vmatpush1.bf16.msra.mxu1 %v1062_v4  ;;  %310 = vmatpush1.bf16.msra.mxu0 %v1062_v4  ;;  %v210_v14 = vsel %vm208_vm0, %v917_v11, 0  ;;  %v1087_v23 = vld [vmem:[#allocation8 + $0x48] sm:$0xff]   ;;  %v1090_v30 = vld [vmem:[#allocation8 + $0x10] sm:$0xff]   ;;  %v1091_v31 = vld [vmem:[#allocation8 + $0x58] sm:$0xff]   ;;  %v401_v63 = vsub.s32 1, %v396_v60  ;;  %s1277_s23 = smov [#allocation11]  }
  0x62   :  { %225 = vmatprep.subr.bf16.mxu1 %v1063_v5  ;;  %311 = vmatprep.subr.bf16.mxu0 %v1063_v5  ;;  %v1079_v24 = vld [vmem:[#allocation7 + $0x4c] ss:$16 sps:$4 sm:$0xff]   ;;  %v1077_v28 = vld [vmem:[#allocation7 + $0x48] ss:$16 sps:$4 sm:$0xff]   ;;  %v1093_v34 = vld [vmem:[#allocation8 + $0x60] sm:$0xff]   ;;  %s890_s24 = sshll.u32 %s1277_s23, 4  ;;  %s891_s24 = int_to_ptr.vmem [resolvable:$true] %s890_s24 }
  0x63   :  { %v1088_v26 = vld [vmem:[#allocation8 + $0x8] sm:$0xff]   ;;  %v1092_v33 = vld [vmem:[#allocation8 + $0x18] sm:$0xff]   ;;  %v1094_v36 = vld [vmem:[#allocation8 + $0x20] sm:$0xff]   ;;  %p1240_p13 = scmp.lt.s32.totalorder %s891_s24, %s891_s24 }
  0x64   :  { %v1082_v29 = vld [vmem:[#allocation7 + $0x6c] ss:$16 sps:$4 sm:$0xff]   ;;  %v1080_v32 = vld [vmem:[#allocation7 + $0x68] ss:$16 sps:$4 sm:$0xff]   ;;  %v1097_v39 = vld [vmem:[#allocation8 + $0x70] sm:$0xff]  }
  0x65   :  { %226 = vmatpush1.bf16.msra.mxu1 %v1065_v6  ;;  %312 = vmatpush1.bf16.msra.mxu0 %v1065_v6  ;;  %v1095_v37 = vld [vmem:[#allocation8 + $0x68] sm:$0xff]   ;;  %v1098_v40 = vld [vmem:[#allocation8 + $0x30] sm:$0xff]   ;;  %v1099_v41 = vld [vmem:[#allocation8 + $0x78] sm:$0xff]  }
  0x66   :  { %227 = vmatprep.subr.bf16.mxu1 %v1066_v7  ;;  %313 = vmatprep.subr.bf16.mxu0 %v1066_v7  ;;  %v1096_v38 = vld [vmem:[#allocation8 + $0x28] sm:$0xff]   ;;  %v1100_v42 = vld [vmem:[#allocation8 + $0x38] sm:$0xff]   ;;  %v1101_v43 = vld [vmem:[#allocation8 + $0xc0] sm:$0xff]  }
  0x67   :  { %v1102_v44 = vld [vmem:[#allocation8 + $0x80] sm:$0xff]   ;;  %v1103_v45 = vld [vmem:[#allocation8 + $0xc8] sm:$0xff]   ;;  %v1105_v47 = vld [vmem:[#allocation8 + $0xd0] sm:$0xff]  }
  0x68   :  { %v1104_v46 = vld [vmem:[#allocation8 + $0x88] sm:$0xff]   ;;  %v1106_v48 = vld [vmem:[#allocation8 + $0x90] sm:$0xff]   ;;  %v1107_v49 = vld [vmem:[#allocation8 + $0xd8] sm:$0xff]  }
  0x69   :  { %228 = vmatpush1.bf16.msra.mxu1 %v1068_v9  ;;  %314 = vmatpush1.bf16.msra.mxu0 %v1068_v9  ;;  %v1108_v50 = vld [vmem:[#allocation8 + $0x98] sm:$0xff]   ;;  %v1109_v51 = vld [vmem:[#allocation8 + $0xe0] sm:$0xff]   ;;  %v1111_v53 = vld [vmem:[#allocation8 + $0xe8] sm:$0xff]  }
  0x6a   :  { %921 = vmatprep.subr.msk.bf16.mxu1 %vm208_vm0, %v918_v10  ;;  %925 = vmatprep.subr.msk.bf16.mxu0 %vm208_vm0, %v918_v10  ;;  %v1110_v52 = vld [vmem:[#allocation8 + $0xa0] sm:$0xff]   ;;  %v1112_v54 = vld [vmem:[#allocation8 + $0xa8] sm:$0xff]   ;;  %v1113_v55 = vld [vmem:[#allocation8 + $0xf0] sm:$0xff]  }
  0x6b   :  { %v1114_v56 = vld [vmem:[#allocation8 + $0xb0] sm:$0xff]   ;;  %v1115_v57 = vld [vmem:[#allocation8 + $0xf8] sm:$0xff]   ;;  %v393_v62 = vld [vmem:[%s1441_s3] sm:$0xf] }
  0x6c   :  { %v1116_v58 = vld [vmem:[#allocation8 + $0xb8] sm:$0xff]   ;;  %v402_v3 = vrot.slane %v393_v62, %v401_v63 }
  0x6d   :  { %230 = vmatpush1.bf16.msra.mxu1 %v210_v14  ;;  %316 = vmatpush1.bf16.msra.mxu0 %v210_v14 }
  0x6e   :  { %262 = vmatprep.subr.bf16.mxu1 %v1073_v12  ;;  %971 = vmatprep.subr.bf16.mxu0 %v1085_v15 }
  0x70   :  { %922 = vmatmul.mubr.msk.bf16.vlgmr.msra.gmra.mrb[0].mxu1 %vm204_vm1, %v95_v16  ;;  %926 = vmatmul.mubr.msk.bf16.vlgmr.msra.gmra.mrb[0].mxu0 %vm204_vm1, %v303_v18 }
  0x71   :  { %263 = vmatpush1.bf16.msra.mxu1 %v1071_v17  ;;  %294 = vmatprep.mubr.bf16.mxu1 %v1274_v0 }
  0x72   :  { %264 = vmatprep.subr.bf16.mxu1 %v1076_v20  ;;  %972 = vmatpush3.bf16.msra.mxu0 %v1086_v21 }
  0x73   :  { %973 = vmatprep.subr.bf16.mxu0 %v1087_v23  ;;  %v409_v23 = vsub.s32 3, %v396_v60 }
  0x75   :  { %265 = vmatpush1.bf16.msra.mxu1 %v1074_v22 }
  0x76   :  { %266 = vmatprep.subr.bf16.mxu1 %v1079_v24  ;;  %974 = vmatpush3.bf16.msra.mxu0 %v1088_v26  ;;  %v410_v26 = vrot.slane %v393_v62, %v409_v23 }
  0x77   :  { %975 = vmatprep.subr.bf16.mxu0 %v1089_v27 }
  0x79   :  { %267 = vmatpush1.bf16.msra.mxu1 %v1077_v28 }
  0x7a   :  { %268 = vmatprep.subr.bf16.mxu1 %v1082_v29  ;;  %976 = vmatpush3.bf16.msra.mxu0 %v1090_v30 }
  0x7b   :  { %977 = vmatprep.subr.bf16.mxu0 %v1091_v31 }
  0x7d   :  { %269 = vmatpush1.bf16.msra.mxu1 %v1080_v32 }
  0x7e   :  { %923 = vmatprep.subr.msk.bf16.mxu1 %vm208_vm0, %v920_v35  ;;  %978 = vmatpush3.bf16.msra.mxu0 %v1092_v33 }
  0x7f   :  { %979 = vmatprep.subr.bf16.mxu0 %v1093_v34 }
  0x81   :  { %271 = vmatpush1.bf16.msra.mxu1 %v216_v25 }
  0x82   :  { %348 = vmatprep.subr.bf16.mxu1 %v1073_v12  ;;  %980 = vmatpush3.bf16.msra.mxu0 %v1094_v36 }
  0x83   :  { %981 = vmatprep.subr.bf16.mxu0 %v1095_v37 }
  0x84   :  { %924 = vmatmul.mubr.msk.bf16.vlgmr.msra.gmra.mrb[4].mxu1 %vm204_vm1, %v95_v16 }
  0x85   :  { %349 = vmatpush1.bf16.msra.mxu1 %v1071_v17  ;;  %380 = vmatprep.mubr.bf16.mxu1 %v1274_v0  ;;  %v398_v0 = vrot.slane %v393_v62, %v397_v61 }
  0x86   :  { %350 = vmatprep.subr.bf16.mxu1 %v1076_v20  ;;  %982 = vmatpush3.bf16.msra.mxu0 %v1096_v38  ;;  %v1117_v38 = vld [vmem:[#allocation10] sm:$0xff]  }
  0x87   :  { %983 = vmatprep.subr.bf16.mxu0 %v1097_v39  ;;  %v1275_v39 = vmov 0.0  }
  0x89   :  { %351 = vmatpush1.bf16.msra.mxu1 %v1074_v22  ;;  %v405_v22 = vsub.s32 2, %v396_v60 }
  0x8a   :  { %352 = vmatprep.subr.bf16.mxu1 %v1079_v24  ;;  %984 = vmatpush3.bf16.msra.mxu0 %v1098_v40  ;;  %v1118_v40 = vld [vmem:[#allocation10 + $0x8] sm:$0xff]  }
  0x8b   :  { %985 = vmatprep.subr.bf16.mxu0 %v1099_v41  ;;  %v406_v24 = vrot.slane %v393_v62, %v405_v22  ;;  %v1119_v41 = vld [vmem:[#allocation10 + $0x10] sm:$0xff]   ;;  %v962_v62 = vld [vmem:[%s1445_s7] ss:$0 sm:$0xff] }
  0x8d   :  { %353 = vmatpush1.bf16.msra.mxu1 %v1077_v28 }
  0x8e   :  { %354 = vmatprep.subr.bf16.mxu1 %v1082_v29  ;;  %986 = vmatpush3.bf16.msra.mxu0 %v1100_v42  ;;  %v1120_v42 = vld [vmem:[#allocation10 + $0x18] sm:$0xff]  }
  0x8f   :  { %1024 = vmatprep.subr.bf16.mxu0 %v1275_v39 }
  0x91   :  { %355 = vmatpush1.bf16.msra.mxu1 %v1080_v32 }
  0x92   :  { %927 = vmatprep.subr.msk.bf16.mxu1 %vm208_vm0, %v920_v35 }
  0x95   :  { %357 = vmatpush1.bf16.msra.mxu1 %v216_v25 }
  0x96   :  { %993 = vmatprep.subr.bf16.mxu1 %v1101_v43  ;;  %v1121_v43 = vld [vmem:[#allocation10 + $0x20] sm:$0xff]  }
  0x98   :  { %928 = vmatmul.mubr.msk.bf16.vlgmr.msra.gmra.mrb[8].mxu1 %vm204_vm1, %v303_v18 }
  0x99   :  { %994 = vmatpush3.bf16.msra.mxu1 %v1102_v44  ;;  %v1122_v44 = vld [vmem:[#allocation10 + $0x28] sm:$0xff]  }
  0x9a   :  { %995 = vmatprep.subr.bf16.mxu1 %v1103_v45  ;;  %v1123_v45 = vld [vmem:[#allocation10 + $0x30] sm:$0xff]  }
  0x9d   :  { %996 = vmatpush3.bf16.msra.mxu1 %v1104_v46  ;;  %v1124_v46 = vld [vmem:[#allocation10 + $0x38] sm:$0xff]  }
  0x9e   :  { %997 = vmatprep.subr.bf16.mxu1 %v1105_v47 }
  0xa1   :  { %998 = vmatpush3.bf16.msra.mxu1 %v1106_v48 }
  0xa2   :  { %999 = vmatprep.subr.bf16.mxu1 %v1107_v49 }
  0xa5   :  { %1000 = vmatpush3.bf16.msra.mxu1 %v1108_v50 }
  0xa6   :  { %1001 = vmatprep.subr.bf16.mxu1 %v1109_v51 }
  0xa9   :  { %1002 = vmatpush3.bf16.msra.mxu1 %v1110_v52  ;;  %v929_v52 = vld [vmem:[%s1443_s5] ss:$0 sm:$0xff]  ;;  %s1235_s5 = scalar_lea.vmem %s891_s24, 128 }
  0xaa   :  { %1003 = vmatprep.subr.bf16.mxu1 %v1111_v53  ;;  %p1236_p12 = scmp.ne.s32.totalorder %s891_s24, %s1235_s5  ;;  %p1241_p0 = scmp.lt.s32.totalorder %s1235_s5, %s1235_s5 }
  0xac   :  { %p1242_p1 = por %p1241_p0, %p1240_p13 }
  0xad   :  { %1004 = vmatpush3.bf16.msra.mxu1 %v1112_v54 }
  0xae   :  { %1005 = vmatprep.subr.bf16.mxu1 %v1113_v55  ;;  %p1243_p2 = pnand %p1242_p1, %p1236_p12 }
  0xb1   :  { %1006 = vmatpush3.bf16.msra.mxu1 %v1114_v56 }
  0xb2   :  { %1007 = vmatprep.subr.bf16.mxu1 %v1115_v57 }
  0xb5   :  { %1008 = vmatpush3.bf16.msra.mxu1 %v1116_v58 }
 0x143   :  { %v255_v1 = vpop.f32.mrb[0].mxu1  ;;  %v341_v2 = vpop.f32.mrb[0].mxu0 }
 0x144   :  { %v389_v4 = vmax.f32 %v255_v1, %v341_v2  ;;  %v257_v5 = vpop.f32.mrb[1].mxu1  ;;  %v343_v6 = vpop.f32.mrb[1].mxu0 }
 0x145   :  { %v390_v7 = vmax.f32 %v257_v5, %v343_v6  ;;  %v259_v8 = vpop.f32.mrb[2].mxu1  ;;  %v345_v9 = vpop.f32.mrb[2].mxu0 }
 0x146   :  { %v415_v10 = vadd.f32 %v398_v0, %v389_v4  ;;  %v260_v11 = vpop.f32.mrb[3].mxu1  ;;  %v346_v12 = vpop.f32.mrb[3].mxu0 }
 0x147   :  { %v416_v13 = vadd.f32 %v402_v3, %v390_v7 }
 0x148   :  { %v419_v14 = vmax.f32 %v415_v10, 0.0 }
 0x149   :  { %v420_v15 = vmax.f32 %v416_v13, 0.0 }
 0x14a   :  { %v423_v16 = vpack.c.bf16 %v419_v14, %v419_v14 }
 0x14b   :  { %v424_v17 = vpack.c.bf16 %v420_v15, %v420_v15 }
 0x14d   :  { %722 = vmatprep.mubr.bf16.mxu0 %v424_v17 }
 0x14e   :  { %723 = vmatmul.mubr.bf16.vlgmr.msra.gmra.mrb[4].mxu0 %v423_v16 }
 0x14f   :  { %1025 = vmatpush3.bf16.msra.mxu0 %v1117_v38  ;;  %1040 = vmatprep.mubr.msk.bf16.mxu0 %vm1276_vm2, %v1275_v39 }
 0x150   :  { %1026 = vmatprep.subr.bf16.mxu0 %v1275_v39 }
 0x153   :  { %1027 = vmatpush3.bf16.msra.mxu0 %v1118_v40 }
 0x154   :  { %1028 = vmatprep.subr.bf16.mxu0 %v1275_v39 }
 0x157   :  { %v296_v18 = vpop.f32.mrb[4].mxu1  ;;  %1029 = vmatpush3.bf16.msra.mxu0 %v1119_v41 }
 0x158   :  { %v298_v19 = vpop.f32.mrb[5].mxu1  ;;  %1030 = vmatprep.subr.bf16.mxu0 %v1275_v39 }
 0x159   :  { %v300_v20 = vpop.f32.mrb[6].mxu1 }
 0x15a   :  { %v301_v21 = vpop.f32.mrb[7].mxu1 }
 0x15b   :  { %1031 = vmatpush3.bf16.msra.mxu0 %v1120_v42 }
 0x15c   :  { %1032 = vmatprep.subr.bf16.mxu0 %v1275_v39 }
 0x15f   :  { %1033 = vmatpush3.bf16.msra.mxu0 %v1121_v43 }
 0x160   :  { %1034 = vmatprep.subr.bf16.mxu0 %v1275_v39 }
 0x163   :  { %1035 = vmatpush3.bf16.msra.mxu0 %v1122_v44 }
 0x164   :  { %1036 = vmatprep.subr.bf16.mxu0 %v1275_v39 }
 0x167   :  { %1037 = vmatpush3.bf16.msra.mxu0 %v1123_v45 }
 0x168   :  { %1038 = vmatprep.subr.bf16.mxu0 %v1275_v39 }
 0x16b   :  { %v382_v25 = vpop.f32.mrb[8].mxu1  ;;  %1039 = vmatpush3.bf16.msra.mxu0 %v1124_v46 }
 0x16c   :  { %v391_v27 = vmax.f32 %v296_v18, %v382_v25  ;;  %v384_v28 = vpop.f32.mrb[9].mxu1 }
 0x16d   :  { %v392_v29 = vmax.f32 %v298_v19, %v384_v28  ;;  %v386_v30 = vpop.f32.mrb[10].mxu1 }
 0x16e   :  { %v417_v31 = vadd.f32 %v406_v24, %v391_v27  ;;  %v387_v32 = vpop.f32.mrb[11].mxu1 }
 0x16f   :  { %v418_v33 = vadd.f32 %v410_v26, %v392_v29 }
 0x170   :  { %v421_v34 = vmax.f32 %v417_v31, 0.0 }
 0x171   :  { %v422_v35 = vmax.f32 %v418_v33, 0.0 }
 0x172   :  { %v425_v37 = vpack.c.bf16 %v421_v34, %v421_v34 }
 0x173   :  { %v426_v36 = vpack.c.bf16 %v422_v35, %v422_v35 }
 0x175   :  { %762 = vmatprep.mubr.bf16.mxu1 %v426_v36 }
 0x176   :  { %763 = vmatmul.mubr.bf16.vlgmr.msra.gmra.mrb[12].mxu1 %v425_v37 }
 0x221   :  { %v987_v47 = vpop.f32.mrb[4].mxu0 }
 0x222   :  { %v988_v48 = vpop.f32.mrb[5].mxu0 }
 0x223   :  { %v989_v49 = vadd.f32 %v988_v48, %v987_v47  ;;  %v990_v50 = vpop.f32.mrb[6].mxu0 }
 0x224   :  { %v991_v51 = vpop.f32.mrb[7].mxu0 }
 0x225   :  { %v725_v55 = vadd.f32 %v989_v49, %v929_v52 }
 0x249   :  { %v1009_v53 = vpop.f32.mrb[12].mxu1 }
 0x24a   :  { %v1010_v54 = vpop.f32.mrb[13].mxu1 }
 0x24b   :  { %v1011_v56 = vadd.f32 %v1010_v54, %v1009_v53  ;;  %v1012_v57 = vpop.f32.mrb[14].mxu1 }
 0x24c   :  { %v1013_v58 = vpop.f32.mrb[15].mxu1 }
 0x24d   :  { %v765_v59 = vadd.f32 %v1011_v56, %v725_v55 }
 0x24f   :  { %v770_v60 = vmax.f32 %v765_v59, 0.0 }
 0x251   :  { %v771_v61 = vpack.c.bf16 %v770_v60, %v770_v60 }
 0x253   :  { %1041 = vmatmul.mubr.bf16.vlgmr.msra.gmra.mrb[8].mxu0 %v771_v61 }
 0x326   :  { %v877_v63 = vpop.f32.mrb[8].mxu0 }
 0x327   :  { %v878_v0 = vadd.f32 %v962_v62, %v877_v63  ;;  %v1042_v1 = vpop.f32.mrb[9].mxu0 }
 0x328   :  { %v880_v2 = vpop.f32.mrb[10].mxu0 }
 0x329   :  { %883 = vst [vmem:[#allocation11] sm:$0xff] %v878_v0  ;;  %v1043_v3 = vpop.f32.mrb[11].mxu0 }
 0x32a   :  { %1246 = shalt.err (!%p1243_p2)
}
 0x32b   :  { %s1247_s7 = scalar_lea.hbm %s1446_s8, 128 }
 0x32c   :  { %p1248_p3 = scmp.ne.s32.totalorder %s1446_s8, %s1247_s7  ;;  %p1251_p4 = scmp.lt.u32.totalorder %s1247_s7, %s1446_s8 }
 0x32e   :  { %p1253_p5 = pnand %p1251_p4, %p1248_p3 }
 0x330   :  { %1256 = shalt.err (!%p1253_p5)
}
 0x331   :  { %893 = dma.vmem_to_hbm [thread:$0]  %s891_s24, 128, %s1446_s8, [#allocation4]  }
 0x332   :  { %1263 = dma.done.wait [#allocation4], 128  }
 0x333   :  { %1264 = vsyncadd [#allocation4], 4294967168 }
 0x334   :  { %897 = vsyncpa [#allocation3], 1 }
 0x335   :  { %898 = vsyncpa [#allocation6], 1 }
 0x336   :  { %899 = vsyncpa [#allocation9], 1 }
 0x337   :  { %900 = vsyncpa [#allocation4], 1 }

</bundles_post_ra>
